<compile_context>
chip_gen: v5e
topology: v5e:2x2
jax: 0.10.0
libtpu: 0.0.40
codegen_flags: <defaults>
</compile_context>

<pallas_src>
import functools

import jax
import jax.numpy as jnp
from jax.experimental import pallas as pl
from jax.experimental.pallas import tpu as pltpu

_LANE = 128
_SUBLANE = 8
_UNROLL_LIMIT = 32      # full Python unroll up to this T; fori_loop beyond


def _round_up(n, m):
    return ((n + m - 1) // m) * m


def _pad2(a, shape, dtype=jnp.float32):
    """Zero-pad a 2-D array up to `shape` (top-left aligned), then cast."""
    out = jnp.zeros(shape, jnp.float32)
    out = out.at[: a.shape[0], : a.shape[1]].set(a.astype(jnp.float32))
    return out.astype(dtype)


def _rnn_kernel(xcol_ref, whx_ref, b_ref, whh_ref, wph_ref, bph_ref,
                out_ref, hx_ref, *, T, Bp):
    """
    xcol_ref : (T*Bp, 8)  f32   time-major x in column 0 (K padded 1 -> 8)
    whx_ref  : (8, Hp)    f32   input->hidden weights in row 0 (K padded)
    b_ref    : (1, Hp)    f32   fused bias: b_hx + b_hh
    whh_ref  : (Hp, Hp)   bf16  hidden->hidden weights (pre-transposed)
    wph_ref  : (Hp, Op)   bf16  hidden->output weights (pre-transposed)
    bph_ref  : (1, Op)    f32   output bias
    out_ref  : (Bp, Op)   f32   lane-dense output tile
    hx_ref   : (T*Bp, Hp) f32   scratch (used only on the fori_loop path)
    """
    # Hoisted input projection + fused bias: one small, tile-aligned matmul
    # that produces every timestep's additive contribution up front (off the
    # serial h-dependency chain).  No lane broadcast needed.
    hx_flat = jnp.dot(xcol_ref[...], whx_ref[...],
                      preferred_element_type=jnp.float32) + b_ref[...]

    whh = whh_ref[...]          # VMEM-resident across all steps
    wph = wph_ref[...]

    def step(hx_i, h):
        # bf16 MXU pass with f32 accumulation; add + tanh stay in f32.
        return jnp.tanh(hx_i + jnp.dot(h.astype(jnp.bfloat16), whh,
                                       preferred_element_type=jnp.float32))

    # h0 == 0, so step 0 reduces exactly to tanh(hx[0]) (one matmul saved).
    h = jnp.tanh(hx_flat[0:Bp, :])

    if T <= _UNROLL_LIMIT:
        # Small static T: full unroll; per-step slices are static and
        # sublane-tile aligned, everything stays in vregs.
        for i in range(1, T):
            h = step(hx_flat[i * Bp:(i + 1) * Bp, :], h)
    else:
        # Large T: bound live ranges with a fori_loop over a VMEM scratch.
        hx_ref[...] = hx_flat
        def body(i, h):
            base = pl.multiple_of(i * Bp, Bp)
            return step(hx_ref[pl.ds(base, Bp), :], h)
        h = jax.lax.fori_loop(1, T, body, h, unroll=4)

    # NOTE: if a bundle dump ever shows the whh RHS being re-staged into the
    # MXU every step, switch the recurrence to the explicit
    # pltpu.matmul_push_rhs / matmul_acc_lhs / matmul_pop API (push whh once).

    # Lane-dense (Bp, Op) store; padded columns are sliced off by the wrapper.
    out_ref[...] = (jnp.dot(h.astype(jnp.bfloat16), wph,
                            preferred_element_type=jnp.float32)
                    + bph_ref[...]).astype(out_ref.dtype)


def prepare_params(params):
    """One-time layout plumbing (call once per parameter set, NOT per forward).

    Pads H/O to the 128-lane vreg width, fuses the two hidden biases, pads the
    input-projection contracting dim 1 -> 8, and casts the two big weight
    matrices to bf16 (MXU-native).  Zero padding stays exact through tanh.
    """
    assert params["whx"].shape[0] == 1, "forward implies input_dim == 1"
    H = params["whh"].shape[0]
    O = params["wph"].shape[1]
    Hp = max(_LANE, _round_up(H, _LANE))   # use 256 granularity on v6e/v7x if H > 128
    Op = max(_LANE, _round_up(O, _LANE))

    return {
        "whx": _pad2(params["whx"], (_SUBLANE, Hp)),               # (8, Hp) f32
        "b":   _pad2(params["bhx"] + params["bhh"], (1, Hp)),      # fused bias
        "whh": _pad2(params["whh"], (Hp, Hp), jnp.bfloat16),       # bf16 MXU RHS
        "wph": _pad2(params["wph"], (Hp, Op), jnp.bfloat16),       # bf16 MXU RHS
        "bph": _pad2(params["bph"], (1, Op)),
    }


@functools.partial(jax.jit, static_argnames=("out_dim",))
def vanilla_rnn_forward(x, prepped, *, out_dim):
    """x: (B, T) float32; prepped: output of prepare_params (padded weights)."""
    B, T = x.shape
    Hp = prepped["whh"].shape[0]
    Op = prepped["wph"].shape[1]
    Bp = max(_SUBLANE, _round_up(B, _SUBLANE))

    # Minimal per-call plumbing (fuses to one small XLA op under jit): pad the
    # batch to a sublane group, go time-major, and lay x out as the K-padded
    # LHS column of the hoisted input-projection matmul.
    x_p = jnp.zeros((Bp, T), jnp.float32).at[:B, :].set(x.astype(jnp.float32))
    x_col = jnp.zeros((T * Bp, _SUBLANE), jnp.float32).at[:, 0].set(
        jnp.transpose(x_p).reshape(-1))

    vmem = lambda: pl.BlockSpec(memory_space=pltpu.MemorySpace.VMEM)
    out_p = pl.pallas_call(
        functools.partial(_rnn_kernel, T=T, Bp=Bp),
        out_shape=jax.ShapeDtypeStruct((Bp, Op), jnp.float32),
        in_specs=[vmem() for _ in range(6)],
        out_specs=vmem(),
        scratch_shapes=[pltpu.VMEM((T * Bp, Hp), jnp.float32)],
    )(x_col, prepped["whx"], prepped["b"], prepped["whh"],
      prepped["wph"], prepped["bph"])

    # For large batches: add a batch grid axis with
    # dimension_semantics=("parallel",) so v7x's second TensorCore contributes.
    return out_p[:B, :out_dim]


def init_params(key, input_dim, hidden_dim, output_dim):
    """Deterministic init mimicking torch.nn.Linear (U(-1/sqrt(fan_in), ...))."""
    ks = jax.random.split(key, 6)

    def uniform(k, shape, fan_in):
        bound = 1.0 / jnp.sqrt(jnp.asarray(fan_in, jnp.float32))
        return jax.random.uniform(k, shape, jnp.float32, -bound, bound)

    # Stored pre-transposed: (in_features, out_features)
    return {
        "whx": uniform(ks[0], (input_dim, hidden_dim), input_dim),
        "bhx": uniform(ks[1], (1, hidden_dim), input_dim),
        "whh": uniform(ks[2], (hidden_dim, hidden_dim), hidden_dim),
        "bhh": uniform(ks[3], (1, hidden_dim), hidden_dim),
        "wph": uniform(ks[4], (hidden_dim, output_dim), hidden_dim),
        "bph": uniform(ks[5], (1, output_dim), hidden_dim),
    }


def vanilla_rnn_reference(x, params):
    """Pure-JAX f32 reference mirroring the PyTorch forward (unpadded)."""
    B = x.shape[0]
    H = params["whx"].shape[1]
    h = jnp.zeros((B, H), jnp.float32)
    for i in range(x.shape[1]):
        xi = x[:, i:i + 1]
        h = jnp.tanh(xi @ params["whx"] + params["bhx"]
                     + h @ params["whh"] + params["bhh"])
    return h @ params["wph"] + params["bph"]


if __name__ == "__main__":
    # Small shapes consistent with the module: input_dim = 1 (x[:, i].unsqueeze(-1)).
    batch, seq_length, input_dim, hidden_dim, output_dim = 8, 8, 1, 32, 10

    key = jax.random.PRNGKey(0)
    kx, kp = jax.random.split(key)
    x = jax.random.normal(kx, (batch, seq_length), dtype=jnp.float32)
    params = init_params(kp, input_dim, hidden_dim, output_dim)

    prepped = prepare_params(params)          # one-time layout plumbing
    out = vanilla_rnn_forward(x, prepped, out_dim=output_dim)
    out = jax.block_until_ready(out)

    ref = vanilla_rnn_reference(x, params)
    assert out.shape == (batch, output_dim)
    # bf16 MXU recurrence => relaxed tolerance vs. the pure-f32 reference.
    assert jnp.allclose(out, ref, atol=5e-2, rtol=1e-2), "Pallas kernel mismatch vs reference"

    print("KERNEL_OK")
</pallas_src>

<mosaic_0001>
module attributes {stable_mosaic.version = 11 : i64} {
  func.func @_rnn_kernel(%arg0: memref<64x8xf32, #tpu.memory_space<vmem>>, %arg1: memref<8x128xf32, #tpu.memory_space<vmem>>, %arg2: memref<1x128xf32, #tpu.memory_space<vmem>>, %arg3: memref<128x128xbf16, #tpu.memory_space<vmem>>, %arg4: memref<128x128xbf16, #tpu.memory_space<vmem>>, %arg5: memref<1x128xf32, #tpu.memory_space<vmem>>, %arg6: memref<8x128xf32, #tpu.memory_space<vmem>>, %arg7: memref<64x128xf32, #tpu.memory_space<vmem>>) attributes {dimension_semantics = [], scalar_prefetch = 0 : i64, scratch_operands = 1 : i64, tpu.core_type = #tpu.core_type<tc>} {
    %c0 = arith.constant 0 : index
    %c0_0 = arith.constant 0 : index
    %0 = vector.load %arg0[%c0, %c0_0] : memref<64x8xf32, #tpu.memory_space<vmem>>, vector<64x8xf32>
    %c0_1 = arith.constant 0 : index
    %c0_2 = arith.constant 0 : index
    %1 = vector.load %arg1[%c0_1, %c0_2] : memref<8x128xf32, #tpu.memory_space<vmem>>, vector<8x128xf32>
    %cst = arith.constant dense<0.000000e+00> : vector<64x128xf32>
    %2 = tpu.matmul %0, %1, %cst {dimension_numbers = #tpu.dot_dimension_numbers<[1], [0], [0], [1], [0, 0, 1, 1], [], []>} : vector<64x8xf32>, vector<8x128xf32>, vector<64x128xf32> -> vector<64x128xf32>
    %c0_3 = arith.constant 0 : index
    %c0_4 = arith.constant 0 : index
    %3 = vector.load %arg2[%c0_3, %c0_4] : memref<1x128xf32, #tpu.memory_space<vmem>>, vector<1x128xf32>
    %4 = vector.broadcast %3 : vector<1x128xf32> to vector<64x128xf32>
    %5 = arith.addf %2, %4 : vector<64x128xf32>
    %c0_5 = arith.constant 0 : index
    %c0_6 = arith.constant 0 : index
    %6 = vector.load %arg3[%c0_5, %c0_6] : memref<128x128xbf16, #tpu.memory_space<vmem>>, vector<128x128xbf16>
    %c0_7 = arith.constant 0 : index
    %c0_8 = arith.constant 0 : index
    %7 = vector.load %arg4[%c0_7, %c0_8] : memref<128x128xbf16, #tpu.memory_space<vmem>>, vector<128x128xbf16>
    %8 = vector.extract_strided_slice %5 {offsets = [0, 0], sizes = [8, 128], strides = [1, 1]} : vector<64x128xf32> to vector<8x128xf32>
    %9 = math.tanh %8 : vector<8x128xf32>
    %10 = vector.extract_strided_slice %5 {offsets = [8, 0], sizes = [8, 128], strides = [1, 1]} : vector<64x128xf32> to vector<8x128xf32>
    %11 = arith.truncf %9 : vector<8x128xf32> to vector<8x128xbf16>
    %cst_9 = arith.constant dense<0.000000e+00> : vector<8x128xf32>
    %12 = tpu.matmul %11, %6, %cst_9 {dimension_numbers = #tpu.dot_dimension_numbers<[1], [0], [0], [1], [0, 0, 1, 1], [], []>} : vector<8x128xbf16>, vector<128x128xbf16>, vector<8x128xf32> -> vector<8x128xf32>
    %13 = arith.addf %10, %12 : vector<8x128xf32>
    %14 = math.tanh %13 : vector<8x128xf32>
    %15 = vector.extract_strided_slice %5 {offsets = [16, 0], sizes = [8, 128], strides = [1, 1]} : vector<64x128xf32> to vector<8x128xf32>
    %16 = arith.truncf %14 : vector<8x128xf32> to vector<8x128xbf16>
    %cst_10 = arith.constant dense<0.000000e+00> : vector<8x128xf32>
    %17 = tpu.matmul %16, %6, %cst_10 {dimension_numbers = #tpu.dot_dimension_numbers<[1], [0], [0], [1], [0, 0, 1, 1], [], []>} : vector<8x128xbf16>, vector<128x128xbf16>, vector<8x128xf32> -> vector<8x128xf32>
    %18 = arith.addf %15, %17 : vector<8x128xf32>
    %19 = math.tanh %18 : vector<8x128xf32>
    %20 = vector.extract_strided_slice %5 {offsets = [24, 0], sizes = [8, 128], strides = [1, 1]} : vector<64x128xf32> to vector<8x128xf32>
    %21 = arith.truncf %19 : vector<8x128xf32> to vector<8x128xbf16>
    %cst_11 = arith.constant dense<0.000000e+00> : vector<8x128xf32>
    %22 = tpu.matmul %21, %6, %cst_11 {dimension_numbers = #tpu.dot_dimension_numbers<[1], [0], [0], [1], [0, 0, 1, 1], [], []>} : vector<8x128xbf16>, vector<128x128xbf16>, vector<8x128xf32> -> vector<8x128xf32>
    %23 = arith.addf %20, %22 : vector<8x128xf32>
    %24 = math.tanh %23 : vector<8x128xf32>
    %25 = vector.extract_strided_slice %5 {offsets = [32, 0], sizes = [8, 128], strides = [1, 1]} : vector<64x128xf32> to vector<8x128xf32>
    %26 = arith.truncf %24 : vector<8x128xf32> to vector<8x128xbf16>
    %cst_12 = arith.constant dense<0.000000e+00> : vector<8x128xf32>
    %27 = tpu.matmul %26, %6, %cst_12 {dimension_numbers = #tpu.dot_dimension_numbers<[1], [0], [0], [1], [0, 0, 1, 1], [], []>} : vector<8x128xbf16>, vector<128x128xbf16>, vector<8x128xf32> -> vector<8x128xf32>
    %28 = arith.addf %25, %27 : vector<8x128xf32>
    %29 = math.tanh %28 : vector<8x128xf32>
    %30 = vector.extract_strided_slice %5 {offsets = [40, 0], sizes = [8, 128], strides = [1, 1]} : vector<64x128xf32> to vector<8x128xf32>
    %31 = arith.truncf %29 : vector<8x128xf32> to vector<8x128xbf16>
    %cst_13 = arith.constant dense<0.000000e+00> : vector<8x128xf32>
    %32 = tpu.matmul %31, %6, %cst_13 {dimension_numbers = #tpu.dot_dimension_numbers<[1], [0], [0], [1], [0, 0, 1, 1], [], []>} : vector<8x128xbf16>, vector<128x128xbf16>, vector<8x128xf32> -> vector<8x128xf32>
    %33 = arith.addf %30, %32 : vector<8x128xf32>
    %34 = math.tanh %33 : vector<8x128xf32>
    %35 = vector.extract_strided_slice %5 {offsets = [48, 0], sizes = [8, 128], strides = [1, 1]} : vector<64x128xf32> to vector<8x128xf32>
    %36 = arith.truncf %34 : vector<8x128xf32> to vector<8x128xbf16>
    %cst_14 = arith.constant dense<0.000000e+00> : vector<8x128xf32>
    %37 = tpu.matmul %36, %6, %cst_14 {dimension_numbers = #tpu.dot_dimension_numbers<[1], [0], [0], [1], [0, 0, 1, 1], [], []>} : vector<8x128xbf16>, vector<128x128xbf16>, vector<8x128xf32> -> vector<8x128xf32>
    %38 = arith.addf %35, %37 : vector<8x128xf32>
    %39 = math.tanh %38 : vector<8x128xf32>
    %40 = vector.extract_strided_slice %5 {offsets = [56, 0], sizes = [8, 128], strides = [1, 1]} : vector<64x128xf32> to vector<8x128xf32>
    %41 = arith.truncf %39 : vector<8x128xf32> to vector<8x128xbf16>
    %cst_15 = arith.constant dense<0.000000e+00> : vector<8x128xf32>
    %42 = tpu.matmul %41, %6, %cst_15 {dimension_numbers = #tpu.dot_dimension_numbers<[1], [0], [0], [1], [0, 0, 1, 1], [], []>} : vector<8x128xbf16>, vector<128x128xbf16>, vector<8x128xf32> -> vector<8x128xf32>
    %43 = arith.addf %40, %42 : vector<8x128xf32>
    %44 = math.tanh %43 : vector<8x128xf32>
    %45 = arith.truncf %44 : vector<8x128xf32> to vector<8x128xbf16>
    %cst_16 = arith.constant dense<0.000000e+00> : vector<8x128xf32>
    %46 = tpu.matmul %45, %7, %cst_16 {dimension_numbers = #tpu.dot_dimension_numbers<[1], [0], [0], [1], [0, 0, 1, 1], [], []>} : vector<8x128xbf16>, vector<128x128xbf16>, vector<8x128xf32> -> vector<8x128xf32>
    %c0_17 = arith.constant 0 : index
    %c0_18 = arith.constant 0 : index
    %47 = vector.load %arg5[%c0_17, %c0_18] : memref<1x128xf32, #tpu.memory_space<vmem>>, vector<1x128xf32>
    %48 = vector.broadcast %47 : vector<1x128xf32> to vector<8x128xf32>
    %49 = arith.addf %46, %48 : vector<8x128xf32>
    %c0_19 = arith.constant 0 : index
    %c0_20 = arith.constant 0 : index
    %50 = vector.load %arg6[%c0_19, %c0_20] : memref<8x128xf32, #tpu.memory_space<vmem>>, vector<8x128xf32>
    tpu.vector_store %arg6[%c0_19, %c0_20], %49 {strides = array<i32>} : memref<8x128xf32, #tpu.memory_space<vmem>>, vector<8x128xf32>,
    return
  }
}

</mosaic_0001>

<bundles_post_ra>
// kernel: vanilla_rnn_forward.1
= control target key start
LH: loop header
LB: loop body
LE: loop exit
PB: predicated region body
PF: predicated region fallthrough
CT: control target
= control target key end

     0   :  { %vm37_vm0 = vcmask 64512   ;;  %s650_s0 = inlined_call_operand.vmem [shape: f32[64,8], index: 0, kind: input, shape index: {}]   ;;  %s651_s1 = inlined_call_operand.vmem [shape: f32[8,128], index: 1, kind: input, shape index: {}]   ;;  %s652_s2 = inlined_call_operand.vmem [shape: f32[1,128], index: 2, kind: input, shape index: {}]   ;;  %s653_s3 = inlined_call_operand.vmem [shape: bf16[128,128], index: 3, kind: input, shape index: {}]   ;;  %s654_s4 = inlined_call_operand.vmem [shape: bf16[128,128], index: 4, kind: input, shape index: {}]   ;;  %s655_s5 = inlined_call_operand.vmem [shape: f32[1,128], index: 5, kind: input, shape index: {}]   ;;  %s656_s6 = inlined_call_operand.hbm [shape: f32[8,128], index: 6, kind: output, shape index: {}]  }
   0x1   :  { %v32_v0 = vld [vmem:[%s651_s1] sm:$0xff]  ;;  %v458_v2 = vld [vmem:[%s653_s3 + $0x38] sm:$0xff]  ;;  %v457_v3 = vld [vmem:[%s653_s3 + $0x30] sm:$0xff] }
   0x2   :  { %v24_v1 = vld [vmem:[%s650_s0] sm:$0xff]  ;;  %77 = vmatpush.msra.mxu0 %v32_v0  ;;  %185 = vmatpush.bf16.msra.mxu1 %v458_v2 }
   0x3   :  { %379 = vmatmul.msk.f32.vlgmr.msra.gmra.mxu0 %vm37_vm0, %v24_v1  ;;  %201 = vmatpush.bf16.msra.mxu2 %v458_v2 }
   0x4   :  { %217 = vmatpush.bf16.msra.mxu3 %v458_v2 }
   0x5   :  { %11 = vsyncpa [#allocation4], 0  ;;  %281 = vmatpush.bf16.msrb.mxu0 %v458_v2  ;;  %v456_v4 = vld [vmem:[%s653_s3 + $0x28] sm:$0xff]  ;;  %v455_v5 = vld [vmem:[%s653_s3 + $0x20] sm:$0xff] }
   0x6   :  { %186 = vmatpush.bf16.msra.mxu1 %v457_v3  ;;  %v454_v6 = vld [vmem:[%s653_s3 + $0x18] sm:$0xff]  ;;  %v453_v7 = vld [vmem:[%s653_s3 + $0x10] sm:$0xff]  ;;  %v452_v8 = vld [vmem:[%s653_s3 + $0x8] sm:$0xff] }
   0x7   :  { %202 = vmatpush.bf16.msra.mxu2 %v457_v3  ;;  %v25_v9 = vld [vmem:[%s650_s0 + $0x8] sm:$0xff]  ;;  %v451_v10 = vld [vmem:[%s653_s3] sm:$0xff]  ;;  %v26_v16 = vld [vmem:[%s650_s0 + $0x10] sm:$0xff] }
   0x8   :  { %218 = vmatpush.bf16.msra.mxu3 %v457_v3  ;;  %v586_v11 = vld [vmem:[%s652_s2] ss:$0 sm:$0xff]  ;;  %v27_v24 = vld [vmem:[%s650_s0 + $0x18] sm:$0xff]  ;;  %v29_v40 = vld [vmem:[%s650_s0 + $0x28] sm:$0xff]  ;;  %s512_s2 = smov [#allocation3]  }
   0x9   :  { %282 = vmatpush.bf16.msrb.mxu0 %v457_v3  ;;  %v28_v32 = vld [vmem:[%s650_s0 + $0x20] sm:$0xff]  ;;  %v30_v48 = vld [vmem:[%s650_s0 + $0x30] sm:$0xff]  ;;  %v31_v56 = vld [vmem:[%s650_s0 + $0x38] sm:$0xff]  ;;  %s368_s21 = sshll.u32 %s512_s2, 4  ;;  %s369_s21 = int_to_ptr.vmem [resolvable:$true] %s368_s21 }
   0xa   :  { %187 = vmatpush.bf16.msra.mxu1 %v456_v4  ;;  %v466_v57 = vld [vmem:[%s654_s4 + $0x38] sm:$0xff]  ;;  %v465_v58 = vld [vmem:[%s654_s4 + $0x30] sm:$0xff]  ;;  %v464_v59 = vld [vmem:[%s654_s4 + $0x28] sm:$0xff] }
   0xb   :  { %203 = vmatpush.bf16.msra.mxu2 %v456_v4  ;;  %380 = vmatmul.msk.f32.gmra.mxu0 %vm37_vm0, %v25_v9 }
   0xc   :  { %219 = vmatpush.bf16.msra.mxu3 %v456_v4 }
   0xd   :  { %283 = vmatpush.bf16.msrb.mxu0 %v456_v4 }
   0xe   :  { %188 = vmatpush.bf16.msra.mxu1 %v455_v5 }
   0xf   :  { %204 = vmatpush.bf16.msra.mxu2 %v455_v5 }
  0x10   :  { %220 = vmatpush.bf16.msra.mxu3 %v455_v5 }
  0x11   :  { %284 = vmatpush.bf16.msrb.mxu0 %v455_v5 }
  0x12   :  { %189 = vmatpush.bf16.msra.mxu1 %v454_v6 }
  0x13   :  { %205 = vmatpush.bf16.msra.mxu2 %v454_v6  ;;  %381 = vmatmul.msk.f32.gmra.mxu0 %vm37_vm0, %v26_v16  ;;  %v469_v16 = vld [vmem:[%s655_s5] ss:$0 sm:$0xff] }
  0x14   :  { %221 = vmatpush.bf16.msra.mxu3 %v454_v6 }
  0x15   :  { %285 = vmatpush.bf16.msrb.mxu0 %v454_v6 }
  0x16   :  { %190 = vmatpush.bf16.msra.mxu1 %v453_v7 }
  0x17   :  { %206 = vmatpush.bf16.msra.mxu2 %v453_v7 }
  0x18   :  { %222 = vmatpush.bf16.msra.mxu3 %v453_v7 }
  0x19   :  { %286 = vmatpush.bf16.msrb.mxu0 %v453_v7 }
  0x1a   :  { %191 = vmatpush.bf16.msra.mxu1 %v452_v8 }
  0x1b   :  { %207 = vmatpush.bf16.msra.mxu2 %v452_v8  ;;  %382 = vmatmul.msk.f32.gmra.mxu0 %vm37_vm0, %v27_v24 }
  0x1c   :  { %223 = vmatpush.bf16.msra.mxu3 %v452_v8 }
  0x1d   :  { %287 = vmatpush.bf16.msrb.mxu0 %v452_v8 }
  0x1e   :  { %192 = vmatpush.bf16.msra.mxu1 %v451_v10 }
  0x1f   :  { %208 = vmatpush.bf16.msra.mxu2 %v451_v10 }
  0x20   :  { %224 = vmatpush.bf16.msra.mxu3 %v451_v10 }
  0x21   :  { %288 = vmatpush.bf16.msrb.mxu0 %v451_v10 }
  0x22   :  { %233 = vmatpush.bf16.msrb.mxu1 %v458_v2 }
  0x23   :  { %249 = vmatpush.bf16.msrb.mxu2 %v458_v2  ;;  %383 = vmatmul.msk.f32.gmra.mxu0 %vm37_vm0, %v28_v32 }
  0x24   :  { %265 = vmatpush.bf16.msrb.mxu3 %v458_v2 }
  0x26   :  { %234 = vmatpush.bf16.msrb.mxu1 %v457_v3 }
  0x27   :  { %250 = vmatpush.bf16.msrb.mxu2 %v457_v3 }
  0x28   :  { %266 = vmatpush.bf16.msrb.mxu3 %v457_v3  ;;  %v463_v3 = vld [vmem:[%s654_s4 + $0x20] sm:$0xff] }
  0x2a   :  { %235 = vmatpush.bf16.msrb.mxu1 %v456_v4 }
  0x2b   :  { %251 = vmatpush.bf16.msrb.mxu2 %v456_v4  ;;  %384 = vmatmul.msk.f32.gmra.mxu0 %vm37_vm0, %v29_v40 }
  0x2c   :  { %267 = vmatpush.bf16.msrb.mxu3 %v456_v4  ;;  %v462_v4 = vld [vmem:[%s654_s4 + $0x18] sm:$0xff] }
  0x2e   :  { %236 = vmatpush.bf16.msrb.mxu1 %v455_v5 }
  0x2f   :  { %252 = vmatpush.bf16.msrb.mxu2 %v455_v5 }
  0x30   :  { %268 = vmatpush.bf16.msrb.mxu3 %v455_v5  ;;  %v461_v5 = vld [vmem:[%s654_s4 + $0x10] sm:$0xff] }
  0x32   :  { %237 = vmatpush.bf16.msrb.mxu1 %v454_v6 }
  0x33   :  { %253 = vmatpush.bf16.msrb.mxu2 %v454_v6  ;;  %385 = vmatmul.msk.f32.gmra.mxu0 %vm37_vm0, %v30_v48 }
  0x34   :  { %269 = vmatpush.bf16.msrb.mxu3 %v454_v6  ;;  %v460_v6 = vld [vmem:[%s654_s4 + $0x8] sm:$0xff] }
  0x36   :  { %238 = vmatpush.bf16.msrb.mxu1 %v453_v7 }
  0x37   :  { %254 = vmatpush.bf16.msrb.mxu2 %v453_v7 }
  0x38   :  { %270 = vmatpush.bf16.msrb.mxu3 %v453_v7  ;;  %v459_v7 = vld [vmem:[%s654_s4] sm:$0xff]  ;;  %s370_s4 = sshll.u32 %s656_s6, 4  ;;  %s371_s4 = int_to_ptr.hbm [resolvable:$true] %s370_s4 }
  0x3a   :  { %239 = vmatpush.bf16.msrb.mxu1 %v452_v8 }
  0x3b   :  { %255 = vmatpush.bf16.msrb.mxu2 %v452_v8  ;;  %386 = vmatmul.msk.f32.gmra.mxu0 %vm37_vm0, %v31_v56 }
  0x3c   :  { %271 = vmatpush.bf16.msrb.mxu3 %v452_v8 }
  0x3e   :  { %240 = vmatpush.bf16.msrb.mxu1 %v451_v10 }
  0x3f   :  { %256 = vmatpush.bf16.msrb.mxu2 %v451_v10 }
  0x40   :  { %272 = vmatpush.bf16.msrb.mxu3 %v451_v10 }
  0x80   :  { %v79_v12 = vpop.f32.mrf.mxu0 }
  0x81   :  { %v80_v13 = vadd.f32 %v586_v11, %v79_v12 }
  0x83   :  { %470 = vtanh.f32 %v80_v13 }
  0x88   :  { %v82_v17 = vpop.f32.mrf.mxu0 }
  0x89   :  { %v471_v14 = vpop.eup %470  ;;  %v83_v18 = vadd.f32 %v586_v11, %v82_v17 }
  0x8a   :  { %v136_v15 = vpack.c.bf16 %v471_v14, %v471_v14 }
  0x8c   :  { %193 = vmatmul.bf16.vlgmr.msra.gmra.mxu1 %v136_v15 }
  0x8d   :  { %349 = vmatpush.bf16.msra.mxu1 %v466_v57 }
  0x90   :  { %v85_v25 = vpop.f32.mrf.mxu0 }
  0x91   :  { %v86_v26 = vadd.f32 %v586_v11, %v85_v25  ;;  %350 = vmatpush.bf16.msra.mxu1 %v465_v58 }
  0x95   :  { %351 = vmatpush.bf16.msra.mxu1 %v464_v59 }
  0x98   :  { %v88_v33 = vpop.f32.mrf.mxu0 }
  0x99   :  { %v89_v34 = vadd.f32 %v586_v11, %v88_v33  ;;  %352 = vmatpush.bf16.msra.mxu1 %v463_v3 }
  0x9d   :  { %353 = vmatpush.bf16.msra.mxu1 %v462_v4 }
  0xa0   :  { %v91_v41 = vpop.f32.mrf.mxu0 }
  0xa1   :  { %v92_v42 = vadd.f32 %v586_v11, %v91_v41  ;;  %354 = vmatpush.bf16.msra.mxu1 %v461_v5 }
  0xa5   :  { %355 = vmatpush.bf16.msra.mxu1 %v460_v6 }
  0xa8   :  { %v94_v49 = vpop.f32.mrf.mxu0 }
  0xa9   :  { %v95_v50 = vadd.f32 %v586_v11, %v94_v49  ;;  %356 = vmatpush.bf16.msra.mxu1 %v459_v7 }
  0xb0   :  { %v97_v60 = vpop.f32.mrf.mxu0 }
  0xb1   :  { %v98_v61 = vadd.f32 %v586_v11, %v97_v60 }
  0xb8   :  { %v100_v8 = vpop.f32.mrf.mxu0 }
  0xb9   :  { %v101_v9 = vadd.f32 %v586_v11, %v100_v8 }
 0x109   :  { %v194_v19 = vpop.f32.mrf.mxu1 }
 0x10a   :  { %v198_v20 = vadd.f32 %v194_v19, %v83_v18 }
 0x10c   :  { %472 = vtanh.f32 %v198_v20 }
 0x111   :  { %v196_v21 = vpop.f32.mrf.mxu1 }
 0x112   :  { %v473_v22 = vpop.eup %472 }
 0x113   :  { %v200_v23 = vpack.c.bf16 %v473_v22, %v473_v22 }
 0x115   :  { %209 = vmatmul.bf16.vlgmr.msra.gmra.mxu2 %v200_v23 }
 0x198   :  { %v210_v27 = vpop.f32.mrf.mxu2 }
 0x199   :  { %v214_v28 = vadd.f32 %v210_v27, %v86_v26 }
 0x19b   :  { %474 = vtanh.f32 %v214_v28 }
 0x1a0   :  { %v212_v29 = vpop.f32.mrf.mxu2 }
 0x1a1   :  { %v475_v30 = vpop.eup %474 }
 0x1a2   :  { %v216_v31 = vpack.c.bf16 %v475_v30, %v475_v30 }
 0x1a4   :  { %225 = vmatmul.bf16.vlgmr.msra.gmra.mxu3 %v216_v31 }
 0x227   :  { %v226_v35 = vpop.f32.mrf.mxu3 }
 0x228   :  { %v230_v36 = vadd.f32 %v226_v35, %v89_v34 }
 0x22a   :  { %476 = vtanh.f32 %v230_v36 }
 0x22f   :  { %v228_v37 = vpop.f32.mrf.mxu3 }
 0x230   :  { %v477_v38 = vpop.eup %476 }
 0x231   :  { %v232_v39 = vpack.c.bf16 %v477_v38, %v477_v38 }
 0x233   :  { %241 = vmatmul.bf16.vlgmr.msrb.gmra.mxu1 %v232_v39 }
 0x2b0   :  { %v242_v43 = vpop.f32.mrf.mxu1 }
 0x2b1   :  { %v246_v44 = vadd.f32 %v242_v43, %v92_v42 }
 0x2b3   :  { %478 = vtanh.f32 %v246_v44 }
 0x2b8   :  { %v244_v45 = vpop.f32.mrf.mxu1 }
 0x2b9   :  { %v479_v46 = vpop.eup %478 }
 0x2ba   :  { %v248_v47 = vpack.c.bf16 %v479_v46, %v479_v46 }
 0x2bc   :  { %257 = vmatmul.bf16.vlgmr.msrb.gmra.mxu2 %v248_v47 }
 0x33f   :  { %v258_v51 = vpop.f32.mrf.mxu2 }
 0x340   :  { %v262_v52 = vadd.f32 %v258_v51, %v95_v50 }
 0x342   :  { %480 = vtanh.f32 %v262_v52 }
 0x347   :  { %v260_v53 = vpop.f32.mrf.mxu2 }
 0x348   :  { %v481_v54 = vpop.eup %480 }
 0x349   :  { %v264_v55 = vpack.c.bf16 %v481_v54, %v481_v54 }
 0x34b   :  { %273 = vmatmul.bf16.vlgmr.msrb.gmra.mxu3 %v264_v55 }
 0x3ce   :  { %v274_v62 = vpop.f32.mrf.mxu3 }
 0x3cf   :  { %v278_v63 = vadd.f32 %v274_v62, %v98_v61 }
 0x3d1   :  { %482 = vtanh.f32 %v278_v63 }
 0x3d6   :  { %v276_v0 = vpop.f32.mrf.mxu3 }
 0x3d7   :  { %v483_v1 = vpop.eup %482 }
 0x3d8   :  { %v280_v2 = vpack.c.bf16 %v483_v1, %v483_v1 }
 0x3da   :  { %289 = vmatmul.bf16.vlgmr.msrb.gmra.mxu0 %v280_v2 }
 0x457   :  { %v290_v10 = vpop.f32.mrf.mxu0 }
 0x458   :  { %v294_v12 = vadd.f32 %v290_v10, %v101_v9 }
 0x45a   :  { %484 = vtanh.f32 %v294_v12 }
 0x45f   :  { %v292_v13 = vpop.f32.mrf.mxu0 }
 0x460   :  { %v485_v14 = vpop.eup %484 }
 0x461   :  { %v296_v15 = vpack.c.bf16 %v485_v14, %v485_v14 }
 0x463   :  { %357 = vmatmul.bf16.vlgmr.msra.gmra.mxu1 %v296_v15 }
 0x4e0   :  { %v358_v17 = vpop.f32.mrf.mxu1 }
 0x4e1   :  { %v359_v18 = vadd.f32 %v469_v16, %v358_v17 }
 0x4e3   :  { %362 = vst [vmem:[#allocation3] sm:$0xff] %v359_v18 }
 0x4e4   :  { %373 = dma.vmem_to_hbm [thread:$0]  %s369_s21, 128, %s371_s4, [#allocation4]  }
 0x4e8   :  { %v360_v11 = vpop.f32.mrf.mxu1 }
 0x4e9   :  { %510 = dma.done.wait [#allocation4], 128  }
 0x4ea   :  { %511 = vsyncadd [#allocation4], 4294967168 }
 0x4eb   :  { %378 = vsyncpa [#allocation4], 1 }

</bundles_post_ra>
